<compile_context>
chip_gen: v7x
topology: tpu7x:2x2x1
jax: 0.10.0
libtpu: 0.0.40
codegen_flags: <defaults>
</compile_context>

<pallas_src>
import jax
import jax.numpy as jnp
from jax.experimental import pallas as pl
from jax.experimental.pallas import tpu as pltpu


# ---------------------------------------------------------------------------
# Tiling / VMEM planning
# ---------------------------------------------------------------------------
def _round_up(a, b):
    return (a + b - 1) // b * b


def _vmem_plan():
    """(block_budget_bytes, vmem_limit_bytes), generation-aware."""
    phys = None
    try:
        phys = getattr(pltpu.get_tpu_info(), "vmem_capacity_bytes", None)
    except Exception:
        phys = None
    if phys is None:
        phys = 64 * 1024 * 1024            # assume the smallest VMEM (v7x)
    if phys >= 96 * 1024 * 1024:
        # v5e / v6e: 128 MiB physical.  v5e's scoped default is only 16 MiB,
        # so vmem_limit_bytes must be raised explicitly for this budget.
        return 24 * 1024 * 1024, 48 * 1024 * 1024
    # v7x: 64 MiB physical — keep live VMEM comfortably under half of it.
    return 16 * 1024 * 1024, 32 * 1024 * 1024


def _pick_tiles(N, HW, C_in, C_out, dtype_bytes, block_budget, max_nb=16):
    """Choose (images per step, pixels per step) from *padded* byte math."""
    sub = max(8, 32 // dtype_bytes)               # sublane pad: 8 f32 / 16 bf16
    cin_p = _round_up(C_in, sub)
    cout_p = _round_up(C_out, sub)
    per_px = 2 * (cin_p + cout_p) * dtype_bytes   # double-buffered in+out / lane
    hw_lanes = _round_up(HW, 128)                 # lane pad of a full pixel row

    per_image = per_px * hw_lanes
    if per_image <= block_budget:
        # Whole pixel row fits: batch images per step to amortize step overhead.
        nb = int(max(1, min(N, max_nb, block_budget // per_image)))
        return nb, HW
    # Large feature map: one image per step, largest lane-aligned pixel tile.
    tile_px = int(max(128, (block_budget // per_px) // 128 * 128))
    if tile_px >= HW:
        return 1, HW
    return 1, tile_px


# ---------------------------------------------------------------------------
# Kernel
# ---------------------------------------------------------------------------
def _make_kernel(nb):
    def kernel(x_ref, w_ref, b_ref, o_ref):
        # x_ref: (Nb, C_in, TPX) VMEM, pixels lane-dense
        # w_ref: (C_out, C_in)   VMEM
        # b_ref: (C_out, 1)      VMEM
        # o_ref: (Nb, C_out, TPX) VMEM
        w = w_ref[...]
        b = b_ref[...]
        for n in range(nb):                        # short, fully unrolled
            x = x_ref[n].astype(jnp.float32)       # (C_in, TPX)
            y = jnp.dot(w, x, preferred_element_type=jnp.float32)   # MXU
            y = y + b                              # (C_out, 1) broadcast
            # sigmoid(y) == 0.5 * tanh(0.5*y) + 0.5 : single EUP transcendental,
            # no VALU divide in the epilogue.
            o_ref[n] = (0.5 * jnp.tanh(0.5 * y) + 0.5).astype(o_ref.dtype)
    return kernel


# ---------------------------------------------------------------------------
# Wrapper
# ---------------------------------------------------------------------------
def outconv_forward(x_nchw, weight, bias):
    """1x1 Conv2d + Sigmoid.  x: (N, C_in, H, W); weight: (C_out, C_in, 1, 1)."""
    N, C_in, H, W = x_nchw.shape
    C_out = weight.shape[0]
    HW = H * W

    # Pure reshapes: pixels land on the 128-wide lane axis, channels on sublanes.
    x3 = x_nchw.reshape(N, C_in, HW)
    w2 = weight.reshape(C_out, C_in).astype(jnp.float32)
    b2 = bias.astype(jnp.float32).reshape(C_out, 1)

    dtype_bytes = jnp.dtype(x_nchw.dtype).itemsize
    block_budget, vmem_limit = _vmem_plan()
    nb, tile_px = _pick_tiles(N, HW, C_in, C_out, dtype_bytes, block_budget)

    n_batch = pl.cdiv(N, nb)
    n_px = pl.cdiv(HW, tile_px)

    # Larger axis first so the megacore split shards it (v7x: 2 TensorCores).
    if n_px >= n_batch:
        grid = (n_px, n_batch)
        x_spec = pl.BlockSpec((nb, C_in, tile_px), lambda j, i: (i, 0, j))
        o_spec = pl.BlockSpec((nb, C_out, tile_px), lambda j, i: (i, 0, j))
    else:
        grid = (n_batch, n_px)
        x_spec = pl.BlockSpec((nb, C_in, tile_px), lambda i, j: (i, 0, j))
        o_spec = pl.BlockSpec((nb, C_out, tile_px), lambda i, j: (i, 0, j))

    w_spec = pl.BlockSpec((C_out, C_in), lambda *_: (0, 0))
    b_spec = pl.BlockSpec((C_out, 1), lambda *_: (0, 0))

    out3 = pl.pallas_call(
        _make_kernel(nb),
        out_shape=jax.ShapeDtypeStruct((N, C_out, HW), x_nchw.dtype),
        grid_spec=pltpu.PrefetchScalarGridSpec(
            num_scalar_prefetch=0,
            grid=grid,
            in_specs=[x_spec, w_spec, b_spec],
            out_specs=o_spec,
        ),
        compiler_params=pltpu.CompilerParams(
            dimension_semantics=("parallel", "parallel"),
            vmem_limit_bytes=vmem_limit,
        ),
        cost_estimate=pl.CostEstimate(
            flops=2 * N * C_out * C_in * HW,
            transcendentals=N * C_out * HW,
            bytes_accessed=dtype_bytes * N * (C_in + C_out) * HW,
        ),
    )(x3, w2, b2)

    return out3.reshape(N, C_out, H, W)


# ---------------------------------------------------------------------------
# Reference + test
# ---------------------------------------------------------------------------
def _reference(x_nchw, weight, bias):
    y = jnp.einsum("nchw,oc->nohw", x_nchw, weight.reshape(weight.shape[0], -1))
    y = y + bias[None, :, None, None]
    return jax.nn.sigmoid(y)


if __name__ == "__main__":
    key = jax.random.PRNGKey(0)
    k_x, k_w, k_b = jax.random.split(key, 3)

    N, C_in, C_out, H, W = 2, 4, 3, 16, 16

    x = jax.random.normal(k_x, (N, C_in, H, W), dtype=jnp.float32)
    weight = jax.random.normal(k_w, (C_out, C_in, 1, 1), dtype=jnp.float32) * 0.5
    bias = jax.random.normal(k_b, (C_out,), dtype=jnp.float32) * 0.1

    fwd = jax.jit(outconv_forward)
    out = jax.block_until_ready(fwd(x, weight, bias))

    ref = _reference(x, weight, bias)
    assert out.shape == (N, C_out, H, W)
    assert jnp.allclose(out, ref, atol=2e-5, rtol=2e-5), float(
        jnp.max(jnp.abs(out - ref))
    )

    print("KERNEL_OK")
</pallas_src>

<mosaic_0001>
module attributes {stable_mosaic.version = 11 : i64} {
  func.func @kernel(%arg0: i32, %arg1: i32, %arg2: memref<2x4x256xf32, #tpu.memory_space<vmem>>, %arg3: memref<3x4xf32, #tpu.memory_space<vmem>>, %arg4: memref<3x1xf32, #tpu.memory_space<vmem>>, %arg5: memref<2x3x256xf32, #tpu.memory_space<vmem>>) attributes {dimension_semantics = [#tpu.dimension_semantics<parallel>, #tpu.dimension_semantics<parallel>], iteration_bounds = array<i64: 1, 1>, scalar_prefetch = 0 : i64, scratch_operands = 0 : i64, tpu.core_type = #tpu.core_type<tc>, window_params = [{transform_indices = @transform_0, window_bounds = array<i64: 2, 4, 256>}, {pipeline_mode = #tpu.pipeline_mode<synchronous>, transform_indices = @transform_1, window_bounds = array<i64: 3, 4>}, {pipeline_mode = #tpu.pipeline_mode<synchronous>, transform_indices = @transform_2, window_bounds = array<i64: 3, 1>}, {transform_indices = @transform_3, window_bounds = array<i64: 2, 3, 256>}]} {
    %c0 = arith.constant 0 : index
    %c0_0 = arith.constant 0 : index
    %0 = vector.load %arg3[%c0, %c0_0] : memref<3x4xf32, #tpu.memory_space<vmem>>, vector<3x4xf32>
    %c0_1 = arith.constant 0 : index
    %c0_2 = arith.constant 0 : index
    %1 = vector.load %arg4[%c0_1, %c0_2] : memref<3x1xf32, #tpu.memory_space<vmem>>, vector<3x1xf32>
    %c0_3 = arith.constant 0 : index
    %c0_4 = arith.constant 0 : index
    %c0_5 = arith.constant 0 : index
    %2 = vector.load %arg2[%c0_3, %c0_4, %c0_5] : memref<2x4x256xf32, #tpu.memory_space<vmem>>, vector<1x4x256xf32>
    %3 = vector.shape_cast %2 : vector<1x4x256xf32> to vector<4x256xf32>
    %cst = arith.constant dense<0.000000e+00> : vector<3x256xf32>
    %4 = tpu.matmul %0, %3, %cst {dimension_numbers = #tpu.dot_dimension_numbers<[1], [0], [0], [1], [0, 0, 1, 1], [], []>} : vector<3x4xf32>, vector<4x256xf32>, vector<3x256xf32> -> vector<3x256xf32>
    %5 = vector.broadcast %1 : vector<3x1xf32> to vector<3x256xf32>
    %6 = arith.addf %4, %5 : vector<3x256xf32>
    %cst_6 = arith.constant 5.000000e-01 : f32
    %7 = vector.broadcast %cst_6 : f32 to vector<3x256xf32>
    %8 = arith.mulf %7, %6 : vector<3x256xf32>
    %9 = math.tanh %8 : vector<3x256xf32>
    %cst_7 = arith.constant 5.000000e-01 : f32
    %10 = vector.broadcast %cst_7 : f32 to vector<3x256xf32>
    %11 = arith.mulf %10, %9 : vector<3x256xf32>
    %cst_8 = arith.constant 5.000000e-01 : f32
    %12 = vector.broadcast %cst_8 : f32 to vector<3x256xf32>
    %13 = arith.addf %11, %12 : vector<3x256xf32>
    %c0_9 = arith.constant 0 : index
    %c0_10 = arith.constant 0 : index
    %c0_11 = arith.constant 0 : index
    %14 = vector.load %arg5[%c0_9, %c0_10, %c0_11] : memref<2x3x256xf32, #tpu.memory_space<vmem>>, vector<1x3x256xf32>
    %15 = vector.shape_cast %14 : vector<1x3x256xf32> to vector<3x256xf32>
    %16 = vector.shape_cast %13 : vector<3x256xf32> to vector<1x3x256xf32>
    tpu.vector_store %arg5[%c0_9, %c0_10, %c0_11], %16 {strides = array<i32>} : memref<2x3x256xf32, #tpu.memory_space<vmem>>, vector<1x3x256xf32>,
    %c1 = arith.constant 1 : index
    %c0_12 = arith.constant 0 : index
    %c0_13 = arith.constant 0 : index
    %17 = vector.load %arg2[%c1, %c0_12, %c0_13] : memref<2x4x256xf32, #tpu.memory_space<vmem>>, vector<1x4x256xf32>
    %18 = vector.shape_cast %17 : vector<1x4x256xf32> to vector<4x256xf32>
    %cst_14 = arith.constant dense<0.000000e+00> : vector<3x256xf32>
    %19 = tpu.matmul %0, %18, %cst_14 {dimension_numbers = #tpu.dot_dimension_numbers<[1], [0], [0], [1], [0, 0, 1, 1], [], []>} : vector<3x4xf32>, vector<4x256xf32>, vector<3x256xf32> -> vector<3x256xf32>
    %20 = vector.broadcast %1 : vector<3x1xf32> to vector<3x256xf32>
    %21 = arith.addf %19, %20 : vector<3x256xf32>
    %cst_15 = arith.constant 5.000000e-01 : f32
    %22 = vector.broadcast %cst_15 : f32 to vector<3x256xf32>
    %23 = arith.mulf %22, %21 : vector<3x256xf32>
    %24 = math.tanh %23 : vector<3x256xf32>
    %cst_16 = arith.constant 5.000000e-01 : f32
    %25 = vector.broadcast %cst_16 : f32 to vector<3x256xf32>
    %26 = arith.mulf %25, %24 : vector<3x256xf32>
    %cst_17 = arith.constant 5.000000e-01 : f32
    %27 = vector.broadcast %cst_17 : f32 to vector<3x256xf32>
    %28 = arith.addf %26, %27 : vector<3x256xf32>
    %c1_18 = arith.constant 1 : index
    %c0_19 = arith.constant 0 : index
    %c0_20 = arith.constant 0 : index
    %29 = vector.load %arg5[%c1_18, %c0_19, %c0_20] : memref<2x3x256xf32, #tpu.memory_space<vmem>>, vector<1x3x256xf32>
    %30 = vector.shape_cast %29 : vector<1x3x256xf32> to vector<3x256xf32>
    %31 = vector.shape_cast %28 : vector<3x256xf32> to vector<1x3x256xf32>
    tpu.vector_store %arg5[%c1_18, %c0_19, %c0_20], %31 {strides = array<i32>} : memref<2x3x256xf32, #tpu.memory_space<vmem>>, vector<1x3x256xf32>,
    return
  }
  func.func @transform_0(%arg0: i32, %arg1: i32) -> (i32, i32, i32) {
    %c0_i32 = arith.constant 0 : i32
    %c0_i32_0 = arith.constant 0 : i32
    return %arg1, %c0_i32, %arg0 : i32, i32, i32
  }
  func.func @transform_1(%arg0: i32, %arg1: i32) -> (i32, i32) {
    %c0_i32 = arith.constant 0 : i32
    %c0_i32_0 = arith.constant 0 : i32
    %c0_i32_1 = arith.constant 0 : i32
    return %c0_i32, %c0_i32_0 : i32, i32
  }
  func.func @transform_2(%arg0: i32, %arg1: i32) -> (i32, i32) {
    %c0_i32 = arith.constant 0 : i32
    %c0_i32_0 = arith.constant 0 : i32
    %c0_i32_1 = arith.constant 0 : i32
    return %c0_i32, %c0_i32_0 : i32, i32
  }
  func.func @transform_3(%arg0: i32, %arg1: i32) -> (i32, i32, i32) {
    %c0_i32 = arith.constant 0 : i32
    %c0_i32_0 = arith.constant 0 : i32
    return %arg1, %c0_i32, %arg0 : i32, i32, i32
  }
}

</mosaic_0001>

<bundles_post_ra>
// kernel: outconv_forward.1
= control target key start
LH: loop header
LB: loop body
LE: loop exit
PB: predicated region body
PF: predicated region fallthrough
CT: control target
= control target key end

     0   :  { %vm28_vm0 = vcmask 1043456   ;;  %v235_v2 = vmov 0.0   ;;  %v236_v5 = vmov 0   ;;  %vm24_vm1 = vcmask 31744   ;;  %s279_s0 = inlined_call_operand.vmem [shape: f32[2,4,256], index: 0, kind: input, shape index: {}]   ;;  %s280_s1 = inlined_call_operand.vmem [shape: f32[3,4], index: 1, kind: input, shape index: {}]   ;;  %s281_s2 = inlined_call_operand.vmem [shape: f32[3,1], index: 2, kind: input, shape index: {}]   ;;  %s282_s3 = inlined_call_operand.vmem [shape: f32[2,3,256], index: 3, kind: output, shape index: {}]  }
   0x1   :  { %v16_v0 = vld [vmem:[%s279_s0] sm:$0xff]  ;;  %v217_v1 = vld [vmem:[%s279_s0 + $0x8] sm:$0xff]  ;;  %97 = vmatprep.mubr.f32.mxu0 %v235_v2  ;;  %189 = vmatprep.mubr.f32.mxu1 %v235_v2 }
   0x2   :  { %v23_v3 = vcombine.high %v16_v0, %v16_v0  ;;  %v120_v4 = vcombine.high %v217_v1, %v217_v1  ;;  %224 = vset.pattern.permute.xlu0 %v236_v5  ;;  %v15_v6 = vld [vmem:[%s281_s2] sm:$0x7] }
   0x3   :  { %v14_v7 = vld [vmem:[%s280_s1] sm:$0x7]  ;;  %19 = vperm.xlu0 %224, %v15_v6  }
   0x4   :  { %214 = vmatprep.subr.msk.mxu0 %vm28_vm0, %v23_v3  ;;  %218 = vmatprep.subr.msk.mxu1 %vm28_vm0, %v120_v4 }
   0x5   :  { %215 = vmatpush1.msk.msra.mxu0 %vm28_vm0, %v16_v0  ;;  %219 = vmatpush1.msk.msra.mxu1 %vm28_vm0, %v217_v1 }
   0x6   :  { %216 = vmatmul.mubr.msk.f32.vlgmr.msra.gmra.mrb[0].mxu0 %vm24_vm1, %v14_v7  ;;  %220 = vmatmul.mubr.msk.f32.vlgmr.msra.gmra.mrb[0].mxu1 %vm24_vm1, %v14_v7 }
  0x82   :  { %v20_v8 = vpop.permute.xlu0 %19 }
  0xd9   :  { %v99_v9 = vpop.f32.mrb[0].mxu0  ;;  %v191_v10 = vpop.f32.mrb[0].mxu1 }
  0xda   :  { %v100_v11 = vadd.f32 %v99_v9, %v20_v8  ;;  %v192_v12 = vadd.f32 %v191_v10, %v20_v8  ;;  %v101_v13 = vpop.f32.mrb[1].mxu0  ;;  %v193_v14 = vpop.f32.mrb[1].mxu1 }
  0xdb   :  { %v102_v15 = vadd.f32 %v101_v13, %v20_v8  ;;  %v194_v16 = vadd.f32 %v193_v14, %v20_v8 }
  0xdc   :  { %v104_v17 = vmul.f32 0.5, %v100_v11  ;;  %v196_v18 = vmul.f32 0.5, %v192_v12 }
  0xdd   :  { %v105_v19 = vmul.f32 0.5, %v102_v15  ;;  %v197_v20 = vmul.f32 0.5, %v194_v16 }
  0xde   :  { %227 = vtanh.f32 %v104_v17 }
  0xdf   :  { %229 = vtanh.f32 %v196_v18 }
  0xe0   :  { %231 = vtanh.f32 %v105_v19 }
  0xe1   :  { %233 = vtanh.f32 %v197_v20 }
  0xe8   :  { %v228_v21 = vpop.eup %227 }
  0xe9   :  { %v230_v22 = vpop.eup %229  ;;  %v108_v23 = vmul.f32 0.5, %v228_v21 }
  0xea   :  { %v232_v24 = vpop.eup %231  ;;  %v200_v25 = vmul.f32 0.5, %v230_v22 }
  0xeb   :  { %v234_v26 = vpop.eup %233  ;;  %v110_v27 = vadd.f32 0.5, %v108_v23  ;;  %v109_v28 = vmul.f32 0.5, %v232_v24 }
  0xec   :  { %v202_v29 = vadd.f32 0.5, %v200_v25  ;;  %v201_v30 = vmul.f32 0.5, %v234_v26 }
  0xed   :  { %v111_v31 = vadd.f32 0.5, %v109_v28 }
  0xee   :  { %v203_v32 = vadd.f32 0.5, %v201_v30 }
  0xef   :  { %v114_v33 = vcombine.low %v110_v27, %v111_v31 }
  0xf0   :  { %v206_v34 = vcombine.low %v202_v29, %v203_v32 }
  0xf1   :  { %116 = vst [vmem:[%s282_s3] sm:$0x77] %v114_v33 }
  0xf2   :  { %221 = vst [vmem:[%s282_s3 + $0x8] sm:$0x77] %v206_v34 }

</bundles_post_ra>
